<compile_context>
chip_gen: v5e
topology: v5e:2x2
jax: 0.10.0
libtpu: 0.0.40
codegen_flags: <defaults>
</compile_context>

<pallas_src>
import jax
import jax.numpy as jnp
from jax.experimental import pallas as pl
from jax.experimental.pallas import tpu as pltpu


_VMEM = pl.BlockSpec(memory_space=pltpu.MemorySpace.VMEM)


# --------------------------------------------------------------------------
# Pallas kernels
# --------------------------------------------------------------------------
def _conv_pool_relu_kernel(p_ref, w_ref, b_ref, o_ref):
    """Fused conv (as matmul) + bias + ReLU + 2x2 max-pool.

    p:(4, K, M) quadrant patch matrices, w:(OC, K), b:(OC, 1), o:(OC, M)
    where M = B*PH*PW is the POOLED batch*spatial axis (lane-dense output).
    o = relu(max_q(w @ p[q]) + b)   (max over the 4 pool-window positions)
    """
    w = w_ref[...]
    acc = jnp.dot(w, p_ref[0], preferred_element_type=jnp.float32)
    for q in range(1, 4):
        acc = jnp.maximum(
            acc, jnp.dot(w, p_ref[q], preferred_element_type=jnp.float32)
        )
    o_ref[...] = jnp.maximum(acc + b_ref[...], 0.0).astype(o_ref.dtype)


def _fc_stack_kernel(x_ref, w1_ref, b1_ref, w2_ref, b2_ref, w3_ref, b3_ref, o_ref):
    """fc1 -> relu -> fc2 -> relu -> fc3, all intermediates stay in VMEM."""
    h = jnp.dot(x_ref[...], w1_ref[...], preferred_element_type=jnp.float32)
    h = jnp.maximum(h + b1_ref[...], 0.0)
    h = jnp.dot(h, w2_ref[...], preferred_element_type=jnp.float32)
    h = jnp.maximum(h + b2_ref[...], 0.0)
    out = jnp.dot(h, w3_ref[...], preferred_element_type=jnp.float32) + b3_ref[...]
    o_ref[...] = out.astype(o_ref.dtype)


# --------------------------------------------------------------------------
# Wrappers
# --------------------------------------------------------------------------
def conv_pool_relu(p_quads, w_mat, bias, out_cols):
    """p_quads:(4,K,M) w_mat:(OC,K) bias:(OC,) -> (OC, M) pooled+relu'd conv."""
    oc = w_mat.shape[0]
    return pl.pallas_call(
        _conv_pool_relu_kernel,
        out_shape=jax.ShapeDtypeStruct((oc, out_cols), jnp.float32),
        in_specs=[_VMEM, _VMEM, _VMEM],
        out_specs=_VMEM,
    )(p_quads, w_mat, bias.reshape(oc, 1))


def fc_stack(x, w1, b1, w2, b2, w3, b3):
    """Fused fc1+relu+fc2+relu+fc3.  Weights are PyTorch-shaped (out, in)."""
    B = x.shape[0]
    n_out = w3.shape[0]
    return pl.pallas_call(
        _fc_stack_kernel,
        out_shape=jax.ShapeDtypeStruct((B, n_out), jnp.float32),
        in_specs=[_VMEM] * 7,
        out_specs=_VMEM,
    )(
        x,
        w1.T, b1.reshape(1, -1),
        w2.T, b2.reshape(1, -1),
        w3.T, b3.reshape(1, -1),
    )


def _pooled_quadrant_patches(x_cbhw, KH, KW):
    """Build im2col patch matrices, one per 2x2 pooling quadrant.

    x_cbhw: (C, B, H, W).  Returns (patches, (PH, PW)) with
      patches: (4, C*KH*KW, B*PH*PW),
      patches[2*dy+dx, c*KH*KW + kh*KW + kw, b*PH*PW + ph*PW + pw]
        = x[c, b, 2*ph + dy + kh, 2*pw + dx + kw]
    i.e. the conv-input patch for conv-output position (2*ph+dy, 2*pw+dx).
    Row ordering (c, kh, kw) matches PyTorch's w.reshape(OC, -1).
    """
    C, B, H, W = x_cbhw.shape
    OH, OW = H - KH + 1, W - KW + 1
    PH, PW = OH // 2, OW // 2
    quads = []
    for dy in range(2):
        for dx in range(2):
            views = [
                x_cbhw[:, :, dy + kh :: 2, dx + kw :: 2][:, :, :PH, :PW]
                for kh in range(KH)
                for kw in range(KW)
            ]                                       # each (C, B, PH, PW)
            p = jnp.stack(views, axis=1)            # (C, KH*KW, B, PH, PW)
            quads.append(p.reshape(C * KH * KW, B * PH * PW))
    return jnp.stack(quads, axis=0), (PH, PW)


# --------------------------------------------------------------------------
# Parameter init (deterministic, PyTorch-like uniform(-1/sqrt(fan_in), +))
# --------------------------------------------------------------------------
def _uniform(key, shape, fan_in):
    bound = 1.0 / jnp.sqrt(jnp.float32(fan_in))
    return jax.random.uniform(key, shape, jnp.float32, -bound, bound)


def init_params(key):
    ks = jax.random.split(key, 10)
    p = {}
    p["conv1_w"] = _uniform(ks[0], (6, 1, 5, 5), 1 * 5 * 5)
    p["conv1_b"] = _uniform(ks[1], (6,), 1 * 5 * 5)
    p["conv2_w"] = _uniform(ks[2], (16, 6, 5, 5), 6 * 5 * 5)
    p["conv2_b"] = _uniform(ks[3], (16,), 6 * 5 * 5)
    p["fc1_w"] = _uniform(ks[4], (120, 16 * 4 * 4), 16 * 4 * 4)
    p["fc1_b"] = _uniform(ks[5], (120,), 16 * 4 * 4)
    p["fc2_w"] = _uniform(ks[6], (84, 120), 120)
    p["fc2_b"] = _uniform(ks[7], (84,), 120)
    p["fc3_w"] = _uniform(ks[8], (10, 84), 84)
    p["fc3_b"] = _uniform(ks[9], (10,), 84)
    return p


# --------------------------------------------------------------------------
# Forward pass (mirrors QuantizedLeNet.forward; quant/dequant are identity)
# --------------------------------------------------------------------------
@jax.jit
def quantized_lenet_forward(x, params):
    # x: (B, 1, 28, 28) float32, NCHW
    B = x.shape[0]

    # conv1 (1->6, 5x5) + ReLU + maxpool(2,2), fused in one kernel
    x_cbhw = jnp.transpose(x, (1, 0, 2, 3))                      # (1, B, 28, 28)
    p1, (ph1, pw1) = _pooled_quadrant_patches(x_cbhw, 5, 5)      # (4, 25, B*144)
    a1 = conv_pool_relu(p1, params["conv1_w"].reshape(6, 25),
                        params["conv1_b"], B * ph1 * pw1)        # (6, B*144)

    # conv2 (6->16, 5x5) + ReLU + maxpool(2,2), fused in one kernel
    a1_cbhw = a1.reshape(6, B, ph1, pw1)                         # already channel-major
    p2, (ph2, pw2) = _pooled_quadrant_patches(a1_cbhw, 5, 5)     # (4, 150, B*16)
    a2 = conv_pool_relu(p2, params["conv2_w"].reshape(16, 150),
                        params["conv2_b"], B * ph2 * pw2)        # (16, B*16)

    # flatten in PyTorch x.reshape(B, -1) order: feature = c*(ph*pw) + h*pw + w
    feat = (a2.reshape(16, B, ph2 * pw2)
              .transpose(1, 0, 2)
              .reshape(B, 16 * ph2 * pw2))                       # (B, 256)

    # fc1 -> relu -> fc2 -> relu -> fc3, fused in one kernel
    return fc_stack(feat,
                    params["fc1_w"], params["fc1_b"],
                    params["fc2_w"], params["fc2_b"],
                    params["fc3_w"], params["fc3_b"])            # (B, 10)


# --------------------------------------------------------------------------
# Plain-JAX reference (for a sanity check of the Pallas path)
# --------------------------------------------------------------------------
def _reference_forward(x, params):
    def conv_relu(t, w, b):
        out = jax.lax.conv_general_dilated(
            t, w, window_strides=(1, 1), padding="VALID",
            dimension_numbers=("NCHW", "OIHW", "NCHW"))
        return jax.nn.relu(out + b[None, :, None, None])

    def pool(t):
        return jnp.maximum(
            jnp.maximum(t[:, :, 0::2, 0::2], t[:, :, 0::2, 1::2]),
            jnp.maximum(t[:, :, 1::2, 0::2], t[:, :, 1::2, 1::2]))

    t = pool(conv_relu(x, params["conv1_w"], params["conv1_b"]))
    t = pool(conv_relu(t, params["conv2_w"], params["conv2_b"]))
    t = t.reshape(t.shape[0], -1)
    t = jax.nn.relu(t @ params["fc1_w"].T + params["fc1_b"])
    t = jax.nn.relu(t @ params["fc2_w"].T + params["fc2_b"])
    return t @ params["fc3_w"].T + params["fc3_b"]


# --------------------------------------------------------------------------
if __name__ == "__main__":
    key = jax.random.PRNGKey(0)
    k_params, k_x = jax.random.split(key)
    params = init_params(k_params)

    # fc1 (16*4*4) implies 28x28 single-channel input; small batch=2.
    x = jax.random.normal(k_x, (2, 1, 28, 28), jnp.float32)

    out = quantized_lenet_forward(x, params)
    out = jax.block_until_ready(out)
    assert out.shape == (2, 10), out.shape

    ref = _reference_forward(x, params)
    err = float(jnp.max(jnp.abs(out - ref)))
    assert err < 1e-1, f"max abs error vs reference: {err}"

    print("KERNEL_OK")
</pallas_src>

<mosaic_0001>
module attributes {stable_mosaic.version = 11 : i64} {
  func.func @_conv_pool_relu_kernel(%arg0: memref<4x25x288xf32, #tpu.memory_space<vmem>>, %arg1: memref<6x25xf32, #tpu.memory_space<vmem>>, %arg2: memref<6x1xf32, #tpu.memory_space<vmem>>, %arg3: memref<6x288xf32, #tpu.memory_space<vmem>>) attributes {dimension_semantics = [], scalar_prefetch = 0 : i64, scratch_operands = 0 : i64, tpu.core_type = #tpu.core_type<tc>} {
    %c0 = arith.constant 0 : index
    %c0_0 = arith.constant 0 : index
    %0 = vector.load %arg1[%c0, %c0_0] : memref<6x25xf32, #tpu.memory_space<vmem>>, vector<6x25xf32>
    %c0_1 = arith.constant 0 : index
    %c0_2 = arith.constant 0 : index
    %c0_3 = arith.constant 0 : index
    %1 = vector.load %arg0[%c0_1, %c0_2, %c0_3] : memref<4x25x288xf32, #tpu.memory_space<vmem>>, vector<1x25x288xf32>
    %2 = vector.shape_cast %1 : vector<1x25x288xf32> to vector<25x288xf32>
    %cst = arith.constant dense<0.000000e+00> : vector<6x288xf32>
    %3 = tpu.matmul %0, %2, %cst {dimension_numbers = #tpu.dot_dimension_numbers<[1], [0], [0], [1], [0, 0, 1, 1], [], []>} : vector<6x25xf32>, vector<25x288xf32>, vector<6x288xf32> -> vector<6x288xf32>
    %c1 = arith.constant 1 : index
    %c0_4 = arith.constant 0 : index
    %c0_5 = arith.constant 0 : index
    %4 = vector.load %arg0[%c1, %c0_4, %c0_5] : memref<4x25x288xf32, #tpu.memory_space<vmem>>, vector<1x25x288xf32>
    %5 = vector.shape_cast %4 : vector<1x25x288xf32> to vector<25x288xf32>
    %cst_6 = arith.constant dense<0.000000e+00> : vector<6x288xf32>
    %6 = tpu.matmul %0, %5, %cst_6 {dimension_numbers = #tpu.dot_dimension_numbers<[1], [0], [0], [1], [0, 0, 1, 1], [], []>} : vector<6x25xf32>, vector<25x288xf32>, vector<6x288xf32> -> vector<6x288xf32>
    %7 = arith.maximumf %3, %6 : vector<6x288xf32>
    %c2 = arith.constant 2 : index
    %c0_7 = arith.constant 0 : index
    %c0_8 = arith.constant 0 : index
    %8 = vector.load %arg0[%c2, %c0_7, %c0_8] : memref<4x25x288xf32, #tpu.memory_space<vmem>>, vector<1x25x288xf32>
    %9 = vector.shape_cast %8 : vector<1x25x288xf32> to vector<25x288xf32>
    %cst_9 = arith.constant dense<0.000000e+00> : vector<6x288xf32>
    %10 = tpu.matmul %0, %9, %cst_9 {dimension_numbers = #tpu.dot_dimension_numbers<[1], [0], [0], [1], [0, 0, 1, 1], [], []>} : vector<6x25xf32>, vector<25x288xf32>, vector<6x288xf32> -> vector<6x288xf32>
    %11 = arith.maximumf %7, %10 : vector<6x288xf32>
    %c3 = arith.constant 3 : index
    %c0_10 = arith.constant 0 : index
    %c0_11 = arith.constant 0 : index
    %12 = vector.load %arg0[%c3, %c0_10, %c0_11] : memref<4x25x288xf32, #tpu.memory_space<vmem>>, vector<1x25x288xf32>
    %13 = vector.shape_cast %12 : vector<1x25x288xf32> to vector<25x288xf32>
    %cst_12 = arith.constant dense<0.000000e+00> : vector<6x288xf32>
    %14 = tpu.matmul %0, %13, %cst_12 {dimension_numbers = #tpu.dot_dimension_numbers<[1], [0], [0], [1], [0, 0, 1, 1], [], []>} : vector<6x25xf32>, vector<25x288xf32>, vector<6x288xf32> -> vector<6x288xf32>
    %15 = arith.maximumf %11, %14 : vector<6x288xf32>
    %c0_13 = arith.constant 0 : index
    %c0_14 = arith.constant 0 : index
    %16 = vector.load %arg2[%c0_13, %c0_14] : memref<6x1xf32, #tpu.memory_space<vmem>>, vector<6x1xf32>
    %17 = vector.broadcast %16 : vector<6x1xf32> to vector<6x288xf32>
    %18 = arith.addf %15, %17 : vector<6x288xf32>
    %cst_15 = arith.constant 0.000000e+00 : f32
    %19 = vector.broadcast %cst_15 : f32 to vector<6x288xf32>
    %20 = arith.maximumf %18, %19 : vector<6x288xf32>
    %c0_16 = arith.constant 0 : index
    %c0_17 = arith.constant 0 : index
    %21 = vector.load %arg3[%c0_16, %c0_17] : memref<6x288xf32, #tpu.memory_space<vmem>>, vector<6x288xf32>
    tpu.vector_store %arg3[%c0_16, %c0_17], %20 {strides = array<i32>} : memref<6x288xf32, #tpu.memory_space<vmem>>, vector<6x288xf32>,
    return
  }
}

module attributes {stable_mosaic.version = 11 : i64} {
  func.func @_conv_pool_relu_kernel(%arg0: memref<4x150x32xf32, #tpu.memory_space<vmem>>, %arg1: memref<16x150xf32, #tpu.memory_space<vmem>>, %arg2: memref<16x1xf32, #tpu.memory_space<vmem>>, %arg3: memref<16x32xf32, #tpu.memory_space<vmem>>) attributes {dimension_semantics = [], scalar_prefetch = 0 : i64, scratch_operands = 0 : i64, tpu.core_type = #tpu.core_type<tc>} {
    %c0 = arith.constant 0 : index
    %c0_0 = arith.constant 0 : index
    %0 = vector.load %arg1[%c0, %c0_0] : memref<16x150xf32, #tpu.memory_space<vmem>>, vector<16x150xf32>
    %c0_1 = arith.constant 0 : index
    %c0_2 = arith.constant 0 : index
    %c0_3 = arith.constant 0 : index
    %1 = vector.load %arg0[%c0_1, %c0_2, %c0_3] : memref<4x150x32xf32, #tpu.memory_space<vmem>>, vector<1x150x32xf32>
    %2 = vector.shape_cast %1 : vector<1x150x32xf32> to vector<150x32xf32>
    %cst = arith.constant dense<0.000000e+00> : vector<16x32xf32>
    %3 = tpu.matmul %0, %2, %cst {dimension_numbers = #tpu.dot_dimension_numbers<[1], [0], [0], [1], [0, 0, 1, 1], [], []>} : vector<16x150xf32>, vector<150x32xf32>, vector<16x32xf32> -> vector<16x32xf32>
    %c1 = arith.constant 1 : index
    %c0_4 = arith.constant 0 : index
    %c0_5 = arith.constant 0 : index
    %4 = vector.load %arg0[%c1, %c0_4, %c0_5] : memref<4x150x32xf32, #tpu.memory_space<vmem>>, vector<1x150x32xf32>
    %5 = vector.shape_cast %4 : vector<1x150x32xf32> to vector<150x32xf32>
    %cst_6 = arith.constant dense<0.000000e+00> : vector<16x32xf32>
    %6 = tpu.matmul %0, %5, %cst_6 {dimension_numbers = #tpu.dot_dimension_numbers<[1], [0], [0], [1], [0, 0, 1, 1], [], []>} : vector<16x150xf32>, vector<150x32xf32>, vector<16x32xf32> -> vector<16x32xf32>
    %7 = arith.maximumf %3, %6 : vector<16x32xf32>
    %c2 = arith.constant 2 : index
    %c0_7 = arith.constant 0 : index
    %c0_8 = arith.constant 0 : index
    %8 = vector.load %arg0[%c2, %c0_7, %c0_8] : memref<4x150x32xf32, #tpu.memory_space<vmem>>, vector<1x150x32xf32>
    %9 = vector.shape_cast %8 : vector<1x150x32xf32> to vector<150x32xf32>
    %cst_9 = arith.constant dense<0.000000e+00> : vector<16x32xf32>
    %10 = tpu.matmul %0, %9, %cst_9 {dimension_numbers = #tpu.dot_dimension_numbers<[1], [0], [0], [1], [0, 0, 1, 1], [], []>} : vector<16x150xf32>, vector<150x32xf32>, vector<16x32xf32> -> vector<16x32xf32>
    %11 = arith.maximumf %7, %10 : vector<16x32xf32>
    %c3 = arith.constant 3 : index
    %c0_10 = arith.constant 0 : index
    %c0_11 = arith.constant 0 : index
    %12 = vector.load %arg0[%c3, %c0_10, %c0_11] : memref<4x150x32xf32, #tpu.memory_space<vmem>>, vector<1x150x32xf32>
    %13 = vector.shape_cast %12 : vector<1x150x32xf32> to vector<150x32xf32>
    %cst_12 = arith.constant dense<0.000000e+00> : vector<16x32xf32>
    %14 = tpu.matmul %0, %13, %cst_12 {dimension_numbers = #tpu.dot_dimension_numbers<[1], [0], [0], [1], [0, 0, 1, 1], [], []>} : vector<16x150xf32>, vector<150x32xf32>, vector<16x32xf32> -> vector<16x32xf32>
    %15 = arith.maximumf %11, %14 : vector<16x32xf32>
    %c0_13 = arith.constant 0 : index
    %c0_14 = arith.constant 0 : index
    %16 = vector.load %arg2[%c0_13, %c0_14] : memref<16x1xf32, #tpu.memory_space<vmem>>, vector<16x1xf32>
    %17 = vector.broadcast %16 : vector<16x1xf32> to vector<16x32xf32>
    %18 = arith.addf %15, %17 : vector<16x32xf32>
    %cst_15 = arith.constant 0.000000e+00 : f32
    %19 = vector.broadcast %cst_15 : f32 to vector<16x32xf32>
    %20 = arith.maximumf %18, %19 : vector<16x32xf32>
    %c0_16 = arith.constant 0 : index
    %c0_17 = arith.constant 0 : index
    %21 = vector.load %arg3[%c0_16, %c0_17] : memref<16x32xf32, #tpu.memory_space<vmem>>, vector<16x32xf32>
    tpu.vector_store %arg3[%c0_16, %c0_17], %20 {strides = array<i32>} : memref<16x32xf32, #tpu.memory_space<vmem>>, vector<16x32xf32>,
    return
  }
}

module attributes {stable_mosaic.version = 11 : i64} {
  func.func @_fc_stack_kernel(%arg0: memref<2x256xf32, #tpu.memory_space<vmem>>, %arg1: memref<256x120xf32, #tpu.memory_space<vmem>>, %arg2: memref<1x120xf32, #tpu.memory_space<vmem>>, %arg3: memref<120x84xf32, #tpu.memory_space<vmem>>, %arg4: memref<1x84xf32, #tpu.memory_space<vmem>>, %arg5: memref<84x10xf32, #tpu.memory_space<vmem>>, %arg6: memref<1x10xf32, #tpu.memory_space<vmem>>, %arg7: memref<2x10xf32, #tpu.memory_space<vmem>>) attributes {dimension_semantics = [], scalar_prefetch = 0 : i64, scratch_operands = 0 : i64, tpu.core_type = #tpu.core_type<tc>} {
    %c0 = arith.constant 0 : index
    %c0_0 = arith.constant 0 : index
    %0 = vector.load %arg0[%c0, %c0_0] : memref<2x256xf32, #tpu.memory_space<vmem>>, vector<2x256xf32>
    %c0_1 = arith.constant 0 : index
    %c0_2 = arith.constant 0 : index
    %1 = vector.load %arg1[%c0_1, %c0_2] : memref<256x120xf32, #tpu.memory_space<vmem>>, vector<256x120xf32>
    %cst = arith.constant dense<0.000000e+00> : vector<2x120xf32>
    %2 = tpu.matmul %0, %1, %cst {dimension_numbers = #tpu.dot_dimension_numbers<[1], [0], [0], [1], [0, 0, 1, 1], [], []>} : vector<2x256xf32>, vector<256x120xf32>, vector<2x120xf32> -> vector<2x120xf32>
    %c0_3 = arith.constant 0 : index
    %c0_4 = arith.constant 0 : index
    %3 = vector.load %arg2[%c0_3, %c0_4] : memref<1x120xf32, #tpu.memory_space<vmem>>, vector<1x120xf32>
    %4 = vector.broadcast %3 : vector<1x120xf32> to vector<2x120xf32>
    %5 = arith.addf %2, %4 : vector<2x120xf32>
    %cst_5 = arith.constant 0.000000e+00 : f32
    %6 = vector.broadcast %cst_5 : f32 to vector<2x120xf32>
    %7 = arith.maximumf %5, %6 : vector<2x120xf32>
    %c0_6 = arith.constant 0 : index
    %c0_7 = arith.constant 0 : index
    %8 = vector.load %arg3[%c0_6, %c0_7] : memref<120x84xf32, #tpu.memory_space<vmem>>, vector<120x84xf32>
    %cst_8 = arith.constant dense<0.000000e+00> : vector<2x84xf32>
    %9 = tpu.matmul %7, %8, %cst_8 {dimension_numbers = #tpu.dot_dimension_numbers<[1], [0], [0], [1], [0, 0, 1, 1], [], []>} : vector<2x120xf32>, vector<120x84xf32>, vector<2x84xf32> -> vector<2x84xf32>
    %c0_9 = arith.constant 0 : index
    %c0_10 = arith.constant 0 : index
    %10 = vector.load %arg4[%c0_9, %c0_10] : memref<1x84xf32, #tpu.memory_space<vmem>>, vector<1x84xf32>
    %11 = vector.broadcast %10 : vector<1x84xf32> to vector<2x84xf32>
    %12 = arith.addf %9, %11 : vector<2x84xf32>
    %cst_11 = arith.constant 0.000000e+00 : f32
    %13 = vector.broadcast %cst_11 : f32 to vector<2x84xf32>
    %14 = arith.maximumf %12, %13 : vector<2x84xf32>
    %c0_12 = arith.constant 0 : index
    %c0_13 = arith.constant 0 : index
    %15 = vector.load %arg5[%c0_12, %c0_13] : memref<84x10xf32, #tpu.memory_space<vmem>>, vector<84x10xf32>
    %cst_14 = arith.constant dense<0.000000e+00> : vector<2x10xf32>
    %16 = tpu.matmul %14, %15, %cst_14 {dimension_numbers = #tpu.dot_dimension_numbers<[1], [0], [0], [1], [0, 0, 1, 1], [], []>} : vector<2x84xf32>, vector<84x10xf32>, vector<2x10xf32> -> vector<2x10xf32>
    %c0_15 = arith.constant 0 : index
    %c0_16 = arith.constant 0 : index
    %17 = vector.load %arg6[%c0_15, %c0_16] : memref<1x10xf32, #tpu.memory_space<vmem>>, vector<1x10xf32>
    %18 = vector.broadcast %17 : vector<1x10xf32> to vector<2x10xf32>
    %19 = arith.addf %16, %18 : vector<2x10xf32>
    %c0_17 = arith.constant 0 : index
    %c0_18 = arith.constant 0 : index
    %20 = vector.load %arg7[%c0_17, %c0_18] : memref<2x10xf32, #tpu.memory_space<vmem>>, vector<2x10xf32>
    tpu.vector_store %arg7[%c0_17, %c0_18], %19 {strides = array<i32>} : memref<2x10xf32, #tpu.memory_space<vmem>>, vector<2x10xf32>,
    return
  }
}

</mosaic_0001>

<bundles_post_ra>
// kernel: quantized_lenet_forward.3
= control target key start
LH: loop header
LB: loop body
LE: loop exit
PB: predicated region body
PF: predicated region fallthrough
CT: control target
= control target key end

     0   :  { %vm31_vm0 = vcmask 1040384   ;;  %v438_v3 = vmov 0   ;;  %vm27_vm1 = vcmask 203776   ;;  %vm370_vm2 = vcmask 259072   ;;  %s656_s0 = inlined_call_operand.vmem [shape: f32[4,25,288], index: 0, kind: input, shape index: {}]   ;;  %s657_s1 = inlined_call_operand.vmem [shape: f32[6,25], index: 1, kind: input, shape index: {}]   ;;  %s658_s2 = inlined_call_operand.vmem [shape: f32[6,1], index: 2, kind: input, shape index: {}]   ;;  %s659_s3 = inlined_call_operand.vmem [shape: f32[6,288], index: 3, kind: output, shape index: {}]  }
   0x1   :  { %v24_v0 = vld [vmem:[%s656_s0 + $0x48] sm:$0x1]  ;;  %v25_v1 = vld [vmem:[%s656_s0 + $0x50] sm:$0x1]  ;;  %v26_v2 = vld [vmem:[%s656_s0 + $0x58] sm:$0x1]  ;;  %437 = vset.pattern.permute.xlu0 %v438_v3 }
   0x2   :  { %376 = vmatpush.msk.msra.mxu0 %vm31_vm0, %v24_v0  ;;  %378 = vmatpush.msk.msra.mxu1 %vm31_vm0, %v25_v1  ;;  %v391_v4 = vld [vmem:[%s656_s0 + $0xa8] sm:$0x1]  ;;  %v21_v5 = vld [vmem:[%s656_s0 + $0x30] sm:$0xff]  ;;  %v22_v6 = vld [vmem:[%s656_s0 + $0x38] sm:$0xff] }
   0x3   :  { %380 = vmatpush.msk.msra.mxu2 %vm31_vm0, %v26_v2  ;;  %394 = vmatpush.msk.msra.mxu3 %vm31_vm0, %v391_v4  ;;  %v23_v7 = vld [vmem:[%s656_s0 + $0x40] sm:$0xff]  ;;  %v388_v8 = vld [vmem:[%s656_s0 + $0x90] sm:$0xff]  ;;  %v18_v9 = vld [vmem:[%s656_s0 + $0x18] sm:$0xff] }
   0x4   :  { %54 = vmatpush.msra.mxu0 %v21_v5  ;;  %74 = vmatpush.msra.mxu1 %v22_v6  ;;  %v19_v10 = vld [vmem:[%s656_s0 + $0x20] sm:$0xff]  ;;  %v20_v11 = vld [vmem:[%s656_s0 + $0x28] sm:$0xff]  ;;  %v385_v12 = vld [vmem:[%s656_s0 + $0x78] sm:$0xff] }
   0x5   :  { %94 = vmatpush.msra.mxu2 %v23_v7  ;;  %136 = vmatpush.msra.mxu3 %v388_v8  ;;  %v15_v13 = vld [vmem:[%s656_s0] sm:$0xff]  ;;  %v16_v14 = vld [vmem:[%s656_s0 + $0x8] sm:$0xff]  ;;  %v17_v15 = vld [vmem:[%s656_s0 + $0x10] sm:$0xff] }
   0x6   :  { %55 = vmatpush.msra.mxu0 %v18_v9  ;;  %75 = vmatpush.msra.mxu1 %v19_v10  ;;  %v382_v16 = vld [vmem:[%s656_s0 + $0x60] sm:$0xff]  ;;  %v409_v18 = vld [vmem:[%s656_s0 + $0x108] sm:$0x1]  ;;  %v410_v19 = vld [vmem:[%s656_s0 + $0x110] sm:$0x1] }
   0x7   :  { %95 = vmatpush.msra.mxu2 %v20_v11  ;;  %137 = vmatpush.msra.mxu3 %v385_v12  ;;  %v514_v17 = vld [vmem:[%s657_s1] sm:$0x3f]  ;;  %v392_v20 = vld [vmem:[%s656_s0 + $0xb0] sm:$0x1]  ;;  %v393_v21 = vld [vmem:[%s656_s0 + $0xb8] sm:$0x1] }
   0x8   :  { %56 = vmatpush.msra.mxu0 %v15_v13  ;;  %76 = vmatpush.msra.mxu1 %v16_v14  ;;  %v406_v22 = vld [vmem:[%s656_s0 + $0xf0] sm:$0xff]  ;;  %v407_v23 = vld [vmem:[%s656_s0 + $0xf8] sm:$0xff]  ;;  %v390_v25 = vld [vmem:[%s656_s0 + $0xa0] sm:$0xff] }
   0x9   :  { %96 = vmatpush.msra.mxu2 %v17_v15  ;;  %138 = vmatpush.msra.mxu3 %v382_v16  ;;  %v389_v24 = vld [vmem:[%s656_s0 + $0x98] sm:$0xff]  ;;  %v404_v27 = vld [vmem:[%s656_s0 + $0xe0] sm:$0xff]  ;;  %v387_v29 = vld [vmem:[%s656_s0 + $0x88] sm:$0xff] }
   0xa   :  { %377 = vmatmul.msk.f32.vlgmr.msra.gmra.mxu0 %vm27_vm1, %v514_v17  ;;  %379 = vmatmul.msk.f32.vlgmr.msra.gmra.mxu1 %vm27_vm1, %v514_v17  ;;  %v403_v26 = vld [vmem:[%s656_s0 + $0xd8] sm:$0xff]  ;;  %v386_v28 = vld [vmem:[%s656_s0 + $0x80] sm:$0xff]  ;;  %v401_v31 = vld [vmem:[%s656_s0 + $0xc8] sm:$0xff] }
   0xb   :  { %381 = vmatmul.msk.f32.vlgmr.msra.gmra.mxu2 %vm27_vm1, %v514_v17  ;;  %395 = vmatmul.msk.f32.vlgmr.msra.gmra.mxu3 %vm27_vm1, %v514_v17  ;;  %v400_v30 = vld [vmem:[%s656_s0 + $0xc0] sm:$0xff]  ;;  %v383_v32 = vld [vmem:[%s656_s0 + $0x68] sm:$0xff]  ;;  %v384_v33 = vld [vmem:[%s656_s0 + $0x70] sm:$0xff] }
   0xc   :  { %412 = vmatpush.msk.msrb.mxu2 %vm31_vm0, %v409_v18  ;;  %414 = vmatpush.msk.msrb.mxu3 %vm31_vm0, %v410_v19  ;;  %v428_v34 = vld [vmem:[%s656_s0 + $0x170] sm:$0x1]  ;;  %v429_v35 = vld [vmem:[%s656_s0 + $0x178] sm:$0x1]  ;;  %v427_v37 = vld [vmem:[%s656_s0 + $0x168] sm:$0x1] }
   0xd   :  { %396 = vmatpush.msk.msrb.mxu0 %vm31_vm0, %v392_v20  ;;  %398 = vmatpush.msk.msrb.mxu1 %vm31_vm0, %v393_v21  ;;  %v411_v36 = vld [vmem:[%s656_s0 + $0x118] sm:$0x1]  ;;  %v426_v39 = vld [vmem:[%s656_s0 + $0x160] sm:$0xff]  ;;  %v424_v41 = vld [vmem:[%s656_s0 + $0x150] sm:$0xff] }
   0xe   :  { %221 = vmatpush.msrb.mxu2 %v406_v22  ;;  %241 = vmatpush.msrb.mxu3 %v407_v23  ;;  %v425_v38 = vld [vmem:[%s656_s0 + $0x158] sm:$0xff]  ;;  %v408_v40 = vld [vmem:[%s656_s0 + $0x100] sm:$0xff]  ;;  %v423_v43 = vld [vmem:[%s656_s0 + $0x148] sm:$0xff] }
   0xf   :  { %156 = vmatpush.msrb.mxu0 %v389_v24  ;;  %176 = vmatpush.msrb.mxu1 %v390_v25  ;;  %v422_v42 = vld [vmem:[%s656_s0 + $0x140] sm:$0xff]  ;;  %v405_v44 = vld [vmem:[%s656_s0 + $0xe8] sm:$0xff]  ;;  %v421_v45 = vld [vmem:[%s656_s0 + $0x138] sm:$0xff] }
  0x10   :  { %222 = vmatpush.msrb.mxu2 %v403_v26  ;;  %242 = vmatpush.msrb.mxu3 %v404_v27  ;;  %v419_v46 = vld [vmem:[%s656_s0 + $0x128] sm:$0xff]  ;;  %v420_v47 = vld [vmem:[%s656_s0 + $0x130] sm:$0xff]  ;;  %v418_v49 = vld [vmem:[%s656_s0 + $0x120] sm:$0xff] }
  0x11   :  { %157 = vmatpush.msrb.mxu0 %v386_v28  ;;  %177 = vmatpush.msrb.mxu1 %v387_v29  ;;  %v402_v48 = vld [vmem:[%s656_s0 + $0xd0] sm:$0xff]  ;;  %v356_v50 = vld [vmem:[%s658_s2] sm:$0x3f] }
  0x12   :  { %223 = vmatpush.msrb.mxu2 %v400_v30  ;;  %243 = vmatpush.msrb.mxu3 %v401_v31 }
  0x13   :  { %158 = vmatpush.msrb.mxu0 %v383_v32  ;;  %178 = vmatpush.msrb.mxu1 %v384_v33 }
  0x14   :  { %397 = vmatmul.msk.f32.vlgmr.msrb.gmra.mxu0 %vm27_vm1, %v514_v17  ;;  %399 = vmatmul.msk.f32.vlgmr.msrb.gmra.mxu1 %vm27_vm1, %v514_v17 }
  0x15   :  { %413 = vmatmul.msk.f32.vlgmr.msrb.gmra.mxu2 %vm27_vm1, %v514_v17  ;;  %415 = vmatmul.msk.f32.vlgmr.msrb.gmra.mxu3 %vm27_vm1, %v514_v17 }
  0x16   :  { %432 = vmatpush.msk.msra.mxu2 %vm31_vm0, %v428_v34  ;;  %434 = vmatpush.msk.msra.mxu3 %vm31_vm0, %v429_v35 }
  0x17   :  { %416 = vmatpush.msk.msra.mxu0 %vm31_vm0, %v411_v36  ;;  %430 = vmatpush.msk.msra.mxu1 %vm31_vm0, %v427_v37 }
  0x18   :  { %326 = vmatpush.msra.mxu2 %v425_v38  ;;  %346 = vmatpush.msra.mxu3 %v426_v39 }
  0x19   :  { %261 = vmatpush.msra.mxu0 %v408_v40  ;;  %306 = vmatpush.msra.mxu1 %v424_v41 }
  0x1a   :  { %327 = vmatpush.msra.mxu2 %v422_v42  ;;  %347 = vmatpush.msra.mxu3 %v423_v43 }
  0x1b   :  { %262 = vmatpush.msra.mxu0 %v405_v44  ;;  %307 = vmatpush.msra.mxu1 %v421_v45 }
  0x1c   :  { %328 = vmatpush.msra.mxu2 %v419_v46  ;;  %348 = vmatpush.msra.mxu3 %v420_v47 }
  0x1d   :  { %263 = vmatpush.msra.mxu0 %v402_v48  ;;  %308 = vmatpush.msra.mxu1 %v418_v49 }
  0x1e   :  { %417 = vmatmul.msk.f32.vlgmr.msra.gmra.mxu0 %vm27_vm1, %v514_v17  ;;  %431 = vmatmul.msk.f32.vlgmr.msra.gmra.mxu1 %vm27_vm1, %v514_v17 }
  0x1f   :  { %433 = vmatmul.msk.f32.vlgmr.msra.gmra.mxu2 %vm27_vm1, %v514_v17  ;;  %435 = vmatmul.msk.f32.vlgmr.msra.gmra.mxu3 %vm27_vm1, %v514_v17 }
  0x20   :  { %359 = vperm.xlu0 %437, %v356_v50  }
  0x87   :  { %v78_v51 = vpop.f32.mrf.mxu1  ;;  %v58_v52 = vpop.f32.mrf.mxu0 }
  0x8e   :  { %v98_v53 = vpop.f32.mrf.mxu2  ;;  %v140_v54 = vpop.f32.mrf.mxu3 }
  0x8f   :  { %v183_v57 = vmax.f32 %v58_v52, %v140_v54 }
  0x91   :  { %v180_v55 = vpop.f32.mrf.mxu1  ;;  %v160_v56 = vpop.f32.mrf.mxu0 }
  0x92   :  { %v360_v62 = vpop.permute.xlu0 %359  ;;  %v184_v2 = vmax.f32 %v78_v51, %v160_v56  ;;  %v185_v3 = vmax.f32 %v98_v53, %v180_v55 }
  0x98   :  { %v225_v58 = vpop.f32.mrf.mxu2  ;;  %v245_v59 = vpop.f32.mrf.mxu3 }
  0x99   :  { %v268_v60 = vmax.f32 %v183_v57, %v225_v58  ;;  %v269_v5 = vmax.f32 %v184_v2, %v245_v59 }
  0x9b   :  { %v310_v61 = vpop.f32.mrf.mxu1  ;;  %v265_v0 = vpop.f32.mrf.mxu0 }
  0x9c   :  { %v353_v63 = vmax.f32 %v268_v60, %v310_v61  ;;  %v270_v6 = vmax.f32 %v185_v3, %v265_v0 }
  0x9e   :  { %v362_v1 = vadd.f32 %v360_v62, %v353_v63 }
  0xa0   :  { %v365_v4 = vmax.f32 %v362_v1, 0.0 }
  0xa2   :  { %368 = vst [vmem:[%s659_s3] sm:$0x3f] %v365_v4  ;;  %v330_v7 = vpop.f32.mrf.mxu2  ;;  %v350_v8 = vpop.f32.mrf.mxu3 }
  0xa3   :  { %v354_v9 = vmax.f32 %v269_v5, %v330_v7  ;;  %v355_v10 = vmax.f32 %v270_v6, %v350_v8 }
  0xa5   :  { %v363_v11 = vadd.f32 %v360_v62, %v354_v9  ;;  %v364_v12 = vadd.f32 %v360_v62, %v355_v10 }
  0xa7   :  { %v366_v13 = vmax.f32 %v363_v11, 0.0  ;;  %v367_v14 = vmax.f32 %v364_v12, 0.0 }
  0xa9   :  { %369 = vst [vmem:[%s659_s3 + $0x8] sm:$0x3f] %v366_v13 }
  0xaa   :  { %371 = vst.msk [vmem:[%s659_s3 + $0x10] sm:$0x3f] %vm370_vm2, %v367_v14 }

// kernel: quantized_lenet_forward.4
= control target key start
LH: loop header
LB: loop body
LE: loop exit
PB: predicated region body
PF: predicated region fallthrough
CT: control target
= control target key end

     0   :  { %vm44_vm0 = vcmask 1045504   ;;  %vm37_vm1 = vcmask 179200   ;;  %vm323_vm2 = vcmask 261120   ;;  %s718_s0 = inlined_call_operand.vmem [shape: f32[4,150,32], index: 0, kind: input, shape index: {}]   ;;  %s719_s1 = inlined_call_operand.vmem [shape: f32[16,150], index: 1, kind: input, shape index: {}]   ;;  %s720_s2 = inlined_call_operand.vmem [shape: f32[16,1], index: 2, kind: input, shape index: {}]   ;;  %s721_s3 = inlined_call_operand.vmem [shape: f32[16,32], index: 3, kind: output, shape index: {}]  }
   0x1   :  { %v33_v0 = vld [vmem:[%s718_s0 + $0x78] sm:$0xff]  ;;  %v36_v1 = vld [vmem:[%s718_s0 + $0x90] sm:$0x3f]  ;;  %v441_v3 = vld [vmem:[%s718_s0 + $0x128] sm:$0x3f] }
   0x2   :  { %v348_v2 = vld [vmem:[%s718_s0 + $0x110] sm:$0xff]  ;;  %48 = vmatpush.msra.mxu0 %v33_v0  ;;  %330 = vmatpush.msk.msra.mxu1 %vm44_vm0, %v36_v1  ;;  %v35_v5 = vld [vmem:[%s718_s0 + $0x88] sm:$0xff]  ;;  %v457_v7 = vld [vmem:[%s718_s0 + $0x120] sm:$0xff] }
   0x3   :  { %v32_v4 = vld [vmem:[%s718_s0 + $0x70] sm:$0xff]  ;;  %117 = vmatpush.msra.mxu2 %v348_v2  ;;  %399 = vmatpush.msk.msra.mxu3 %vm44_vm0, %v441_v3  ;;  %v347_v6 = vld [vmem:[%s718_s0 + $0x108] sm:$0xff]  ;;  %v34_v9 = vld [vmem:[%s718_s0 + $0x80] sm:$0xff] }
   0x4   :  { %v31_v8 = vld [vmem:[%s718_s0 + $0x68] sm:$0xff]  ;;  %49 = vmatpush.msra.mxu0 %v32_v4  ;;  %85 = vmatpush.msra.mxu1 %v35_v5  ;;  %v346_v10 = vld [vmem:[%s718_s0 + $0x100] sm:$0xff]  ;;  %v471_v11 = vld [vmem:[%s718_s0 + $0x118] sm:$0xff] }
   0x5   :  { %118 = vmatpush.msra.mxu2 %v347_v6  ;;  %400 = vmatpush.msra.mxu3 %v457_v7  ;;  %v370_v12 = vld [vmem:[%s718_s0 + $0x1a8] sm:$0xff]  ;;  %v373_v13 = vld [vmem:[%s718_s0 + $0x1c0] sm:$0x3f]  ;;  %v345_v15 = vld [vmem:[%s718_s0 + $0xf8] sm:$0xff] }
   0x6   :  { %50 = vmatpush.msra.mxu0 %v31_v8  ;;  %86 = vmatpush.msra.mxu1 %v34_v9  ;;  %v30_v14 = vld [vmem:[%s718_s0 + $0x60] sm:$0xff]  ;;  %v372_v17 = vld [vmem:[%s718_s0 + $0x1b8] sm:$0xff]  ;;  %v344_v19 = vld [vmem:[%s718_s0 + $0xf0] sm:$0xff] }
   0x7   :  { %119 = vmatpush.msra.mxu2 %v346_v10  ;;  %401 = vmatpush.msra.mxu3 %v471_v11  ;;  %v369_v16 = vld [vmem:[%s718_s0 + $0x1a0] sm:$0xff]  ;;  %v29_v18 = vld [vmem:[%s718_s0 + $0x58] sm:$0xff]  ;;  %v371_v21 = vld [vmem:[%s718_s0 + $0x1b0] sm:$0xff] }
   0x8   :  { %188 = vmatpush.msrb.mxu1 %v370_v12  ;;  %51 = vmatpush.msra.mxu0 %v30_v14  ;;  %v368_v20 = vld [vmem:[%s718_s0 + $0x198] sm:$0xff]  ;;  %v28_v22 = vld [vmem:[%s718_s0 + $0x50] sm:$0xff]  ;;  %v343_v23 = vld [vmem:[%s718_s0 + $0xe8] sm:$0xff] }
   0x9   :  { %374 = vmatpush.msk.msrb.mxu3 %vm44_vm0, %v373_v13  ;;  %120 = vmatpush.msra.mxu2 %v345_v15  ;;  %v515_v24 = vld [vmem:[%s719_s1 + $0x18] sm:$0xff]  ;;  %v367_v25 = vld [vmem:[%s718_s0 + $0x190] sm:$0xff]  ;;  %v392_v26 = vld [vmem:[%s718_s0 + $0x240] sm:$0xff] }
   0xa   :  { %189 = vmatpush.msrb.mxu1 %v369_v16  ;;  %52 = vmatpush.msra.mxu0 %v29_v18  ;;  %v27_v27 = vld [vmem:[%s718_s0 + $0x48] sm:$0xff]  ;;  %v342_v28 = vld [vmem:[%s718_s0 + $0xe0] sm:$0xff]  ;;  %v391_v30 = vld [vmem:[%s718_s0 + $0x238] sm:$0xff]  ;;  %v407_v18 = vmov 0  }
   0xb   :  { %225 = vmatpush.msrb.mxu3 %v372_v17  ;;  %121 = vmatpush.msra.mxu2 %v344_v19  ;;  %v366_v29 = vld [vmem:[%s718_s0 + $0x188] sm:$0xff]  ;;  %v26_v31 = vld [vmem:[%s718_s0 + $0x40] sm:$0xff]  ;;  %v341_v32 = vld [vmem:[%s718_s0 + $0xd8] sm:$0xff] }
   0xc   :  { %190 = vmatpush.msrb.mxu1 %v368_v20  ;;  %53 = vmatpush.msra.mxu0 %v28_v22  ;;  %v365_v33 = vld [vmem:[%s718_s0 + $0x180] sm:$0xff]  ;;  %v390_v34 = vld [vmem:[%s718_s0 + $0x230] sm:$0xff]  ;;  %v25_v35 = vld [vmem:[%s718_s0 + $0x38] sm:$0xff] }
   0xd   :  { %226 = vmatpush.msrb.mxu3 %v371_v21  ;;  %122 = vmatpush.msra.mxu2 %v343_v23  ;;  %v340_v36 = vld [vmem:[%s718_s0 + $0xd0] sm:$0xff]  ;;  %v364_v37 = vld [vmem:[%s718_s0 + $0x178] sm:$0xff]  ;;  %v389_v38 = vld [vmem:[%s718_s0 + $0x228] sm:$0xff] }
   0xe   :  { %354 = vmatmul.msk.f32.vlgmr.msra.gmra.mxu3 %vm37_vm1, %v515_v24  ;;  %191 = vmatpush.msrb.mxu1 %v367_v25  ;;  %v24_v39 = vld [vmem:[%s718_s0 + $0x30] sm:$0xff]  ;;  %v339_v40 = vld [vmem:[%s718_s0 + $0xc8] sm:$0xff]  ;;  %v388_v42 = vld [vmem:[%s718_s0 + $0x220] sm:$0xff] }
   0xf   :  { %259 = vmatpush.msra.mxu3 %v392_v26  ;;  %54 = vmatpush.msra.mxu0 %v27_v27  ;;  %v363_v41 = vld [vmem:[%s718_s0 + $0x170] sm:$0xff]  ;;  %v23_v43 = vld [vmem:[%s718_s0 + $0x28] sm:$0xff]  ;;  %v338_v45 = vld [vmem:[%s718_s0 + $0xc0] sm:$0xff] }
  0x10   :  { %123 = vmatpush.msra.mxu2 %v342_v28  ;;  %192 = vmatpush.msrb.mxu1 %v366_v29  ;;  %v579_v44 = vld [vmem:[%s719_s1 + $0x8] sm:$0xff]  ;;  %v387_v46 = vld [vmem:[%s718_s0 + $0x218] sm:$0xff]  ;;  %v22_v48 = vld [vmem:[%s718_s0 + $0x20] sm:$0xff] }
  0x11   :  { %260 = vmatpush.msra.mxu3 %v391_v30  ;;  %55 = vmatpush.msra.mxu0 %v26_v31  ;;  %v362_v47 = vld [vmem:[%s718_s0 + $0x168] sm:$0xff]  ;;  %v337_v49 = vld [vmem:[%s718_s0 + $0xb8] sm:$0xff]  ;;  %v386_v50 = vld [vmem:[%s718_s0 + $0x210] sm:$0xff] }
  0x12   :  { %124 = vmatpush.msra.mxu2 %v341_v32  ;;  %193 = vmatpush.msrb.mxu1 %v365_v33  ;;  %v361_v51 = vld [vmem:[%s718_s0 + $0x160] sm:$0xff]  ;;  %v21_v52 = vld [vmem:[%s718_s0 + $0x18] sm:$0xff]  ;;  %v336_v53 = vld [vmem:[%s718_s0 + $0xb0] sm:$0xff] }
  0x13   :  { %261 = vmatpush.msra.mxu3 %v390_v34  ;;  %56 = vmatpush.msra.mxu0 %v25_v35  ;;  %v385_v54 = vld [vmem:[%s718_s0 + $0x208] sm:$0xff]  ;;  %v360_v55 = vld [vmem:[%s718_s0 + $0x158] sm:$0xff]  ;;  %v20_v56 = vld [vmem:[%s718_s0 + $0x10] sm:$0xff] }
  0x14   :  { %125 = vmatpush.msra.mxu2 %v340_v36  ;;  %194 = vmatpush.msrb.mxu1 %v364_v37  ;;  %v335_v57 = vld [vmem:[%s718_s0 + $0xa8] sm:$0xff]  ;;  %v384_v58 = vld [vmem:[%s718_s0 + $0x200] sm:$0xff]  ;;  %v359_v59 = vld [vmem:[%s718_s0 + $0x150] sm:$0xff] }
  0x15   :  { %262 = vmatpush.msra.mxu3 %v389_v38  ;;  %57 = vmatpush.msra.mxu0 %v24_v39  ;;  %v19_v60 = vld [vmem:[%s718_s0 + $0x8] sm:$0xff]  ;;  %v334_v61 = vld [vmem:[%s718_s0 + $0xa0] sm:$0xff]  ;;  %v383_v62 = vld [vmem:[%s718_s0 + $0x1f8] sm:$0xff] }
  0x16   :  { %126 = vmatpush.msra.mxu2 %v339_v40  ;;  %195 = vmatpush.msrb.mxu1 %v363_v41  ;;  %v358_v63 = vld [vmem:[%s718_s0 + $0x148] sm:$0xff]  ;;  %v18_v0 = vld [vmem:[%s718_s0] sm:$0xff]  ;;  %v333_v1 = vld [vmem:[%s718_s0 + $0x98] sm:$0xff] }
  0x17   :  { %263 = vmatpush.msra.mxu3 %v388_v42  ;;  %58 = vmatpush.msra.mxu0 %v23_v43  ;;  %v382_v2 = vld [vmem:[%s718_s0 + $0x1f0] sm:$0xff]  ;;  %v14_v4 = vld [vmem:[%s719_s1] sm:$0xff]  ;;  %v381_v6 = vld [vmem:[%s718_s0 + $0x1e8] sm:$0xff] }
  0x18   :  { %331 = vmatmul.msk.f32.vlgmr.msra.gmra.mxu1 %vm37_vm1, %v579_v44  ;;  %127 = vmatpush.msra.mxu2 %v338_v45  ;;  %v357_v5 = vld [vmem:[%s718_s0 + $0x140] sm:$0xff]  ;;  %v356_v8 = vld [vmem:[%s718_s0 + $0x138] sm:$0xff]  ;;  %v355_v10 = vld [vmem:[%s718_s0 + $0x130] sm:$0xff] }
  0x19   :  { %264 = vmatpush.msra.mxu3 %v387_v46  ;;  %196 = vmatpush.msrb.mxu1 %v362_v47  ;;  %v380_v9 = vld [vmem:[%s718_s0 + $0x1e0] sm:$0xff]  ;;  %v395_v12 = vld [vmem:[%s718_s0 + $0x258] sm:$0x3f]  ;;  %v16_v14 = vld [vmem:[%s719_s1 + $0x10] sm:$0xff] }
  0x1a   :  { %59 = vmatpush.msra.mxu0 %v22_v48  ;;  %128 = vmatpush.msra.mxu2 %v337_v49  ;;  %v379_v13 = vld [vmem:[%s718_s0 + $0x1d8] sm:$0xff]  ;;  %v394_v15 = vld [vmem:[%s718_s0 + $0x250] sm:$0xff]  ;;  %v393_v16 = vld [vmem:[%s718_s0 + $0x248] sm:$0xff] }
  0x1b   :  { %265 = vmatpush.msra.mxu3 %v386_v50  ;;  %197 = vmatpush.msrb.mxu1 %v361_v51  ;;  %v307_v17 = vld [vmem:[%s720_s2] sm:$0xff] }
  0x1c   :  { %60 = vmatpush.msra.mxu0 %v21_v52  ;;  %129 = vmatpush.msra.mxu2 %v336_v53 }
  0x1d   :  { %266 = vmatpush.msra.mxu3 %v385_v54  ;;  %198 = vmatpush.msrb.mxu1 %v360_v55 }
  0x1e   :  { %375 = vmatmul.msk.f32.vlgmr.msrb.gmra.mxu3 %vm37_vm1, %v579_v44  ;;  %61 = vmatpush.msra.mxu0 %v20_v56 }
  0x1f   :  { %130 = vmatpush.msra.mxu2 %v335_v57  ;;  %267 = vmatpush.msra.mxu3 %v384_v58 }
  0x20   :  { %199 = vmatpush.msrb.mxu1 %v359_v59  ;;  %62 = vmatpush.msra.mxu0 %v19_v60 }
  0x21   :  { %332 = vmatmul.msk.f32.gmra.mxu1 %vm37_vm1, %v515_v24  ;;  %131 = vmatpush.msra.mxu2 %v334_v61 }
  0x22   :  { %268 = vmatpush.msra.mxu3 %v383_v62  ;;  %200 = vmatpush.msrb.mxu1 %v358_v63 }
  0x23   :  { %63 = vmatpush.msra.mxu0 %v18_v0  ;;  %132 = vmatpush.msra.mxu2 %v333_v1 }
  0x24   :  { %269 = vmatpush.msra.mxu3 %v382_v2  ;;  %64 = vmatmul.f32.vlgmr.msra.gmra.mxu0 %v14_v4 }
  0x25   :  { %133 = vmatmul.f32.vlgmr.msra.gmra.mxu2 %v14_v4  ;;  %201 = vmatpush.msrb.mxu1 %v357_v5 }
  0x26   :  { %352 = vmatpush.msk.msrb.mxu2 %vm44_vm0, %v441_v3  ;;  %270 = vmatpush.msra.mxu3 %v381_v6  ;;  %v378_v3 = vld [vmem:[%s718_s0 + $0x1d0] sm:$0xff] }
  0x27   :  { %202 = vmatpush.msrb.mxu1 %v356_v8  ;;  %376 = vmatmul.msk.f32.gmra.mxu3 %vm37_vm1, %v515_v24 }
  0x28   :  { %271 = vmatpush.msra.mxu3 %v380_v9  ;;  %154 = vmatpush.msrb.mxu2 %v457_v7  ;;  %v377_v7 = vld [vmem:[%s718_s0 + $0x1c8] sm:$0xff] }
  0x29   :  { %203 = vmatpush.msrb.mxu1 %v355_v10  ;;  %396 = vmatpush.msk.msrb.mxu0 %vm44_vm0, %v395_v12 }
  0x2a   :  { %204 = vmatmul.f32.vlgmr.msrb.gmra.mxu1 %v14_v4  ;;  %272 = vmatpush.msra.mxu3 %v379_v13 }
  0x2b   :  { %402 = vmatpush.msk.msra.mxu1 %vm44_vm0, %v395_v12  ;;  %155 = vmatpush.msrb.mxu2 %v471_v11  ;;  %v308_v11 = vld [vmem:[%s720_s2 + $0x8] sm:$0xff] }
  0x2c   :  { %273 = vmatpush.msra.mxu3 %v378_v3  ;;  %67 = vmatmul.f32.gmra.mxu0 %v16_v14 }
  0x2d   :  { %136 = vmatmul.f32.gmra.mxu2 %v16_v14  ;;  %296 = vmatpush.msrb.mxu0 %v394_v15 }
  0x2e   :  { %274 = vmatpush.msra.mxu3 %v377_v7  ;;  %403 = vmatpush.msra.mxu1 %v394_v15 }
  0x2f   :  { %275 = vmatmul.f32.vlgmr.msra.gmra.mxu3 %v14_v4  ;;  %297 = vmatpush.msrb.mxu0 %v393_v16 }
  0x30   :  { %404 = vmatpush.msra.mxu1 %v393_v16  ;;  %406 = vset.pattern.permute.xlu0 %v407_v18 }
  0x31   :  { %311 = vperm.xlu0 %406, %v307_v17  }
  0x32   :  { %207 = vmatmul.f32.gmra.mxu1 %v16_v14 }
  0x34   :  { %397 = vmatmul.msk.f32.vlgmr.msrb.gmra.mxu0 %vm37_vm1, %v579_v44 }
  0x35   :  { %353 = vmatmul.msk.f32.vlgmr.msrb.gmra.mxu2 %vm37_vm1, %v579_v44 }
  0x37   :  { %278 = vmatmul.f32.gmra.mxu3 %v16_v14 }
  0x39   :  { %316 = vperm.xlu0 %406, %v308_v11  }
  0x3a   :  { %398 = vmatmul.msk.f32.vlgmr.msra.gmra.mxu1 %vm37_vm1, %v515_v24 }
  0x91   :  { %v160_v20 = vpop.f32.mrf.mxu3 }
  0x95   :  { %v88_v19 = vpop.f32.mrf.mxu1 }
  0x9e   :  { %v91_v21 = vpop.f32.mrf.mxu1 }
  0xa1   :  { %v228_v22 = vpop.f32.mrf.mxu3  ;;  %v65_v25 = vpop.f32.mrf.mxu0 }
  0xa2   :  { %v89_v38 = vadd.f32 %v88_v19, %v65_v25 }
  0xa3   :  { %v312_v33 = vpop.permute.xlu0 %311 }
  0xa7   :  { %v205_v23 = vpop.f32.mrf.mxu1 }
  0xa8   :  { %v134_v26 = vpop.f32.mrf.mxu2  ;;  %v229_v42 = vadd.f32 %v228_v22, %v205_v23 }
  0xa9   :  { %v68_v30 = vpop.f32.mrf.mxu0 }
  0xaa   :  { %v231_v27 = vpop.f32.mrf.mxu3  ;;  %v92_v34 = vadd.f32 %v91_v21, %v68_v30 }
  0xab   :  { %v317_v49 = vpop.permute.xlu0 %316 }
  0xaf   :  { %v208_v28 = vpop.f32.mrf.mxu1 }
  0xb0   :  { %v137_v29 = vpop.f32.mrf.mxu2  ;;  %v232_v24 = vadd.f32 %v231_v27, %v208_v28 }
  0xb1   :  { %v161_v32 = vadd.f32 %v160_v20, %v137_v29  ;;  %v299_v40 = vpop.f32.mrf.mxu0 }
  0xb2   :  { %v276_v31 = vpop.f32.mrf.mxu3 }
  0xb3   :  { %v164_v35 = vmax.f32 %v92_v34, %v161_v32  ;;  %v300_v46 = vadd.f32 %v299_v40, %v276_v31 }
  0xb5   :  { %v235_v44 = vmax.f32 %v164_v35, %v232_v24 }
  0xb7   :  { %v302_v37 = vpop.f32.mrf.mxu1 }
  0xb8   :  { %v157_v36 = vpop.f32.mrf.mxu2 }
  0xb9   :  { %v158_v39 = vadd.f32 %v157_v36, %v134_v26 }
  0xba   :  { %v279_v41 = vpop.f32.mrf.mxu3 }
  0xbb   :  { %v163_v43 = vmax.f32 %v89_v38, %v158_v39  ;;  %v303_v45 = vadd.f32 %v302_v37, %v279_v41 }
  0xbd   :  { %v234_v47 = vmax.f32 %v163_v43, %v229_v42  ;;  %v306_v48 = vmax.f32 %v235_v44, %v303_v45 }
  0xbf   :  { %v305_v50 = vmax.f32 %v234_v47, %v300_v46  ;;  %v320_v51 = vadd.f32 %v317_v49, %v306_v48 }
  0xc1   :  { %v319_v52 = vadd.f32 %v312_v33, %v305_v50  ;;  %v322_v53 = vmax.f32 %v320_v51, 0.0 }
  0xc3   :  { %v321_v54 = vmax.f32 %v319_v52, 0.0  ;;  %325 = vst.msk [vmem:[%s721_s3 + $0x8] sm:$0xff] %vm323_vm2, %v322_v53 }
  0xc5   :  { %324 = vst.msk [vmem:[%s721_s3] sm:$0xff] %vm323_vm2, %v321_v54 }

// kernel: quantized_lenet_forward.5
= control target key start
LH: loop header
LB: loop body
LE: loop exit
PB: predicated region body
PF: predicated region fallthrough
CT: control target
= control target key end

     0   :  { %s479_s0 = inlined_call_operand.vmem [shape: f32[2,256], index: 0, kind: input, shape index: {}]   ;;  %s480_s1 = inlined_call_operand.vmem [shape: f32[256,120], index: 1, kind: input, shape index: {}]   ;;  %s481_s2 = inlined_call_operand.vmem [shape: f32[1,120], index: 2, kind: input, shape index: {}]   ;;  %s482_s3 = inlined_call_operand.vmem [shape: f32[120,84], index: 3, kind: input, shape index: {}]   ;;  %s483_s4 = inlined_call_operand.vmem [shape: f32[1,84], index: 4, kind: input, shape index: {}]   ;;  %s484_s5 = inlined_call_operand.vmem [shape: f32[84,10], index: 5, kind: input, shape index: {}]   ;;  %s485_s6 = inlined_call_operand.vmem [shape: f32[1,10], index: 6, kind: input, shape index: {}]   ;;  %s486_s7 = inlined_call_operand.hbm [shape: f32[2,10], index: 7, kind: output, shape index: {}]  }
   0x1   :  { %v43_v0 = vld [vmem:[%s480_s1 + $0x78] sm:$0xff]  ;;  %v42_v1 = vld [vmem:[%s480_s1 + $0x70] sm:$0xff]  ;;  %v41_v4 = vld [vmem:[%s480_s1 + $0x68] sm:$0xff] }
   0x2   :  { %v59_v2 = vld [vmem:[%s480_s1 + $0xf8] sm:$0xff]  ;;  %70 = vmatpush.msra.mxu0 %v43_v0  ;;  %v58_v3 = vld [vmem:[%s480_s1 + $0xf0] sm:$0xff]  ;;  %v57_v5 = vld [vmem:[%s480_s1 + $0xe8] sm:$0xff] }
   0x3   :  { %90 = vmatpush.msra.mxu1 %v59_v2  ;;  %v40_v6 = vld [vmem:[%s480_s1 + $0x60] sm:$0xff]  ;;  %v39_v8 = vld [vmem:[%s480_s1 + $0x58] sm:$0xff]  ;;  %v38_v10 = vld [vmem:[%s480_s1 + $0x50] sm:$0xff] }
   0x4   :  { %71 = vmatpush.msra.mxu0 %v42_v1  ;;  %v56_v7 = vld [vmem:[%s480_s1 + $0xe0] sm:$0xff]  ;;  %v55_v9 = vld [vmem:[%s480_s1 + $0xd8] sm:$0xff]  ;;  %v54_v11 = vld [vmem:[%s480_s1 + $0xd0] sm:$0xff] }
   0x5   :  { %91 = vmatpush.msra.mxu1 %v58_v3  ;;  %v37_v12 = vld [vmem:[%s480_s1 + $0x48] sm:$0xff]  ;;  %v27_v14 = vld [vmem:[%s479_s0] sm:$0xf]  ;;  %v125_v15 = vld [vmem:[%s482_s3 + $0x70] sm:$0xff] }
   0x6   :  { %72 = vmatpush.msra.mxu0 %v41_v4  ;;  %v53_v13 = vld [vmem:[%s480_s1 + $0xc8] sm:$0xff]  ;;  %65 = vst [vmem:[#allocation1] ss:$4 sm:$0xff] %v27_v14  ;;  %v36_v17 = vld [vmem:[%s480_s1 + $0x40] sm:$0xff]  ;;  %135 = vmatpush.msra.mxu2 %v125_v15  ;;  %v35_v20 = vld [vmem:[%s480_s1 + $0x38] sm:$0xff] }
   0x7   :  { %92 = vmatpush.msra.mxu1 %v57_v5  ;;  %v124_v16 = vld [vmem:[%s482_s3 + $0x68] sm:$0xff]  ;;  %v52_v18 = vld [vmem:[%s480_s1 + $0xc0] sm:$0xff]  ;;  %v51_v21 = vld [vmem:[%s480_s1 + $0xb8] sm:$0xff] }
   0x8   :  { %73 = vmatpush.msra.mxu0 %v40_v6  ;;  %v123_v19 = vld [vmem:[%s482_s3 + $0x60] sm:$0xff]  ;;  %136 = vmatpush.msra.mxu2 %v124_v16  ;;  %v122_v22 = vld [vmem:[%s482_s3 + $0x58] sm:$0xff]  ;;  %v34_v23 = vld [vmem:[%s480_s1 + $0x30] sm:$0xff] }
   0x9   :  { %93 = vmatpush.msra.mxu1 %v56_v7  ;;  %v50_v24 = vld [vmem:[%s480_s1 + $0xb0] sm:$0xff] }
   0xa   :  { %74 = vmatpush.msra.mxu0 %v39_v8  ;;  %137 = vmatpush.msra.mxu2 %v123_v19 }
   0xb   :  { %94 = vmatpush.msra.mxu1 %v55_v9 }
   0xc   :  { %75 = vmatpush.msra.mxu0 %v38_v10 }
   0xd   :  { %95 = vmatpush.msra.mxu1 %v54_v11 }
   0xe   :  { %76 = vmatpush.msra.mxu0 %v37_v12 }
   0xf   :  { %96 = vmatpush.msra.mxu1 %v53_v13 }
  0x10   :  { %77 = vmatpush.msra.mxu0 %v36_v17 }
  0x11   :  { %97 = vmatpush.msra.mxu1 %v52_v18 }
  0x12   :  { %12 = vsyncpa [#allocation3], 0  ;;  %78 = vmatpush.msra.mxu0 %v35_v20  ;;  %v121_v25 = vld [vmem:[%s482_s3 + $0x50] sm:$0xff]  ;;  %v33_v26 = vld [vmem:[%s480_s1 + $0x28] sm:$0xff]  ;;  %138 = vmatpush.msra.mxu2 %v122_v22  ;;  %vm174_vm0 = vcmask 1043456   ;;  %vm130_vm1 = vcmask 982016  }
  0x13   :  { %98 = vmatpush.msra.mxu1 %v51_v21  ;;  %v49_v27 = vld [vmem:[%s480_s1 + $0xa8] sm:$0xff]  ;;  %v32_v29 = vld [vmem:[%s480_s1 + $0x20] sm:$0xff]  ;;  %v31_v32 = vld [vmem:[%s480_s1 + $0x18] sm:$0xff]  ;;  %vm170_vm2 = vcmask 687104   ;;  %s249_s25 = smov [#allocation2]   ;;  %vm198_vm3 = vcmask 74752  }
  0x14   :  { %79 = vmatpush.msra.mxu0 %v34_v23  ;;  %v120_v28 = vld [vmem:[%s482_s3 + $0x48] sm:$0xff]  ;;  %v48_v30 = vld [vmem:[%s480_s1 + $0xa0] sm:$0xff]  ;;  %139 = vmatpush.msra.mxu2 %v121_v25  ;;  %v47_v33 = vld [vmem:[%s480_s1 + $0x98] sm:$0xff]  ;;  %s205_s26 = sshll.u32 %s249_s25, 4  ;;  %s206_s26 = int_to_ptr.vmem [resolvable:$true] %s205_s26 }
  0x15   :  { %99 = vmatpush.msra.mxu1 %v50_v24  ;;  %v119_v31 = vld [vmem:[%s482_s3 + $0x40] sm:$0xff]  ;;  %v118_v34 = vld [vmem:[%s482_s3 + $0x38] sm:$0xff]  ;;  %v30_v35 = vld [vmem:[%s480_s1 + $0x10] sm:$0xff] }
  0x16   :  { %80 = vmatpush.msra.mxu0 %v33_v26  ;;  %140 = vmatpush.msra.mxu2 %v120_v28  ;;  %v46_v36 = vld [vmem:[%s480_s1 + $0x90] sm:$0xff]  ;;  %v29_v38 = vld [vmem:[%s480_s1 + $0x8] sm:$0xff]  ;;  %v28_v41 = vld [vmem:[%s480_s1] sm:$0xff] }
  0x17   :  { %100 = vmatpush.msra.mxu1 %v49_v27  ;;  %v117_v37 = vld [vmem:[%s482_s3 + $0x30] sm:$0xff]  ;;  %v45_v39 = vld [vmem:[%s480_s1 + $0x88] sm:$0xff]  ;;  %v44_v42 = vld [vmem:[%s480_s1 + $0x80] sm:$0xff] }
  0x18   :  { %81 = vmatpush.msra.mxu0 %v32_v29  ;;  %141 = vmatpush.msra.mxu2 %v119_v31  ;;  %v116_v40 = vld [vmem:[%s482_s3 + $0x28] sm:$0xff]  ;;  %v66_v43 = vld.sshfl [vmem:[#allocation1] sm:$0xff pattern:$0x73625140]  ;;  %v114_v46 = vld [vmem:[%s482_s3 + $0x18] sm:$0xff] }
  0x19   :  { %101 = vmatpush.msra.mxu1 %v48_v30  ;;  %v67_v44 = vld.sshfl [vmem:[#allocation1 + $0x8] sm:$0xff pattern:$0x73625140]  ;;  %v115_v45 = vld [vmem:[%s482_s3 + $0x20] sm:$0xff]  ;;  %v113_v47 = vld [vmem:[%s482_s3 + $0x10] sm:$0xff] }
  0x1a   :  { %82 = vmatpush.msra.mxu0 %v31_v32  ;;  %142 = vmatpush.msra.mxu2 %v118_v34  ;;  %v112_v48 = vld [vmem:[%s482_s3 + $0x8] sm:$0xff]  ;;  %v111_v49 = vld [vmem:[%s482_s3] sm:$0xff]  ;;  %v165_v50 = vld [vmem:[%s484_s5 + $0x50] sm:$0xf] }
  0x1b   :  { %102 = vmatpush.msra.mxu1 %v47_v33  ;;  %v164_v51 = vld [vmem:[%s484_s5 + $0x48] sm:$0xff]  ;;  %217 = vmatpush.msk.msra.mxu3 %vm174_vm0, %v165_v50  ;;  %v163_v52 = vld [vmem:[%s484_s5 + $0x40] sm:$0xff]  ;;  %v162_v53 = vld [vmem:[%s484_s5 + $0x38] sm:$0xff] }
  0x1c   :  { %83 = vmatpush.msra.mxu0 %v30_v35  ;;  %143 = vmatpush.msra.mxu2 %v117_v37  ;;  %v161_v54 = vld [vmem:[%s484_s5 + $0x30] sm:$0xff]  ;;  %v160_v55 = vld [vmem:[%s484_s5 + $0x28] sm:$0xff]  ;;  %v159_v56 = vld [vmem:[%s484_s5 + $0x20] sm:$0xff] }
  0x1d   :  { %103 = vmatpush.msra.mxu1 %v46_v36  ;;  %184 = vmatpush.msra.mxu3 %v164_v51  ;;  %v158_v57 = vld [vmem:[%s484_s5 + $0x18] sm:$0xff]  ;;  %v220_v58 = vld [vmem:[%s481_s2] ss:$0 sm:$0xff]  ;;  %v157_v0 = vld [vmem:[%s484_s5 + $0x10] sm:$0xff] }
  0x1e   :  { %84 = vmatpush.msra.mxu0 %v29_v38  ;;  %144 = vmatpush.msra.mxu2 %v116_v40  ;;  %v156_v1 = vld [vmem:[%s484_s5 + $0x8] sm:$0xff]  ;;  %v155_v2 = vld [vmem:[%s484_s5] sm:$0xff]  ;;  %s207_s5 = sshll.u32 %s486_s7, 4  ;;  %s208_s5 = int_to_ptr.hbm [resolvable:$true] %s207_s5 }
  0x1f   :  { %104 = vmatpush.msra.mxu1 %v45_v39  ;;  %185 = vmatpush.msra.mxu3 %v163_v52  ;;  %v221_v3 = vld [vmem:[%s483_s4] ss:$0 sm:$0xff] }
  0x20   :  { %85 = vmatpush.msra.mxu0 %v28_v41  ;;  %145 = vmatpush.msra.mxu2 %v115_v45  ;;  %v222_v7 = vld [vmem:[%s485_s6] ss:$0 sm:$0xff] }
  0x21   :  { %105 = vmatpush.msra.mxu1 %v44_v42  ;;  %86 = vmatmul.f32.vlgmr.msra.gmra.mxu0 %v66_v43 }
  0x22   :  { %106 = vmatmul.f32.vlgmr.msra.gmra.mxu1 %v67_v44  ;;  %146 = vmatpush.msra.mxu2 %v114_v46 }
  0x23   :  { %186 = vmatpush.msra.mxu3 %v162_v53 }
  0x24   :  { %147 = vmatpush.msra.mxu2 %v113_v47 }
  0x25   :  { %187 = vmatpush.msra.mxu3 %v161_v54 }
  0x26   :  { %148 = vmatpush.msra.mxu2 %v112_v48 }
  0x27   :  { %188 = vmatpush.msra.mxu3 %v160_v55 }
  0x28   :  { %149 = vmatpush.msra.mxu2 %v111_v49 }
  0x29   :  { %189 = vmatpush.msra.mxu3 %v159_v56 }
  0x2b   :  { %190 = vmatpush.msra.mxu3 %v158_v57 }
  0x2d   :  { %191 = vmatpush.msra.mxu3 %v157_v0 }
  0x2f   :  { %192 = vmatpush.msra.mxu3 %v156_v1 }
  0x31   :  { %193 = vmatpush.msra.mxu3 %v155_v2 }
  0x9e   :  { %v87_v59 = vpop.f32.mrf.mxu0 }
  0x9f   :  { %v107_v60 = vpop.f32.mrf.mxu1  ;;  %v88_v61 = vadd.f32 %v220_v58, %v87_v59 }
  0xa1   :  { %v108_v62 = vadd.f32 %v107_v60, %v88_v61 }
  0xa3   :  { %v110_v63 = vmax.f32 %v108_v62, 0.0 }
  0xa5   :  { %216 = vmatmul.msk.f32.vlgmr.msra.gmra.mxu2 %vm130_vm1, %v110_v63 }
 0x128   :  { %v151_v4 = vpop.f32.mrf.mxu2 }
 0x129   :  { %v152_v5 = vadd.f32 %v221_v3, %v151_v4 }
 0x12b   :  { %v154_v6 = vmax.f32 %v152_v5, 0.0 }
 0x12d   :  { %218 = vmatmul.msk.f32.vlgmr.msra.gmra.mxu3 %vm170_vm2, %v154_v6 }
 0x1b0   :  { %v195_v8 = vpop.f32.mrf.mxu3 }
 0x1b1   :  { %v196_v9 = vadd.f32 %v222_v7, %v195_v8 }
 0x1b3   :  { %199 = vst.msk [vmem:[#allocation2] sm:$0x3] %vm198_vm3, %v196_v9 }
 0x1b4   :  { %210 = dma.vmem_to_hbm [thread:$0]  %s206_s26, 32, %s208_s5, [#allocation3]  }
 0x1b5   :  { %247 = dma.done.wait [#allocation3], 32  }
 0x1b6   :  { %248 = vsyncadd [#allocation3], 4294967264 }
 0x1b7   :  { %215 = vsyncpa [#allocation3], 1 }

</bundles_post_ra>
